<compile_context>
chip_gen: v7x
topology: tpu7x:2x2x1
jax: 0.10.0
libtpu: 0.0.40
codegen_flags: <defaults>
</compile_context>

<pallas_src>
import functools
import math

import jax
import jax.numpy as jnp
from jax import lax
from jax.experimental import pallas as pl
from jax.experimental.pallas import tpu as pltpu


def _round_up(x, m):
    return ((x + m - 1) // m) * m


def _gelu_exact(x):
    # PyTorch nn.GELU default: exact erf-based GELU, computed in f32.
    # TODO(synk): optional tanh-approx GELU (single EUP op) if the erf VALU polynomial
    # ever co-bottlenecks the MXU at production hidden sizes on v6e/v7x.
    return 0.5 * x * (1.0 + lax.erf(x * (1.0 / math.sqrt(2.0))))


def mlp_kernel(x_ref, w1_ref, b1_ref, w2_ref, b2_ref, o_ref, acc_ref):
    """One (batch, spatial-tile, hidden-slab) grid step.

    Blocks (channels-first; lane axis = spatial tile -> lane-dense stores):
      x_ref : (C_in,   ts)      w1_ref: (k_slab, C_in)    b1_ref: (k_slab, 1)
      w2_ref: (C_out, k_slab)   b2_ref: (C_out, 1)
      o_ref : (C_out,  ts)      acc_ref: (C_out, ts) f32 scratch
    """
    k = pl.program_id(2)

    @pl.when(k == 0)
    def _():
        acc_ref[...] = jnp.zeros_like(acc_ref)

    cdt = w1_ref.dtype                                    # MXU compute dtype (f32/bf16)
    x = x_ref[...].astype(cdt)
    h = jnp.dot(w1_ref[...], x, preferred_element_type=jnp.float32)
    h = h + b1_ref[...].astype(jnp.float32)               # broadcast over lanes
    h = _gelu_exact(h)                                     # f32 elementwise epilogue
    # Dropout(p=0.0) is the identity -> no-op.
    acc_ref[...] += jnp.dot(w2_ref[...], h.astype(cdt),
                            preferred_element_type=jnp.float32)

    @pl.when(k == pl.num_programs(2) - 1)
    def _():
        o_ref[...] = (acc_ref[...] + b2_ref[...].astype(jnp.float32)).astype(o_ref.dtype)


def _choose_hidden_slab(c_hid, max_slab=512):
    """Hidden-dim slab for the k grid axis (bounds weight + hidden residency)."""
    if c_hid <= max_slab:
        return c_hid
    for align in (256, 128):        # slab must be a multiple of 128 (w2 lane dim)
        t = (max_slab // align) * align
        while t >= align:
            if c_hid % t == 0:
                return t
            t -= align
    return c_hid                    # no clean slab -> keep full hidden dim resident


def _choose_spatial_tile(S, cap):
    """Largest spatial tile <= cap; avoid padding whenever a divisor tile exists."""
    cap = max(128, (cap // 128) * 128)
    if S <= cap:
        ts = _round_up(S, 128)      # single tile (no padding when S % 128 == 0)
        return ts, ts
    for align in (256, 128):        # prefer 256-aligned tiles (fills v6e/v7x MXU)
        t = (cap // align) * align
        while t >= align:
            if S % t == 0:
                return t, S
            t -= align
    ts = cap
    return ts, _round_up(S, ts)


def mlp_forward_nchw(x_nchw, params, *, tile_s=None, hid_slab=512,
                     single_buffer_consts=True):
    """Full Mlp forward matching PyTorch semantics. x_nchw: (N, C_in, H, W)."""
    w1, b1, w2, b2 = params          # (C_hid,C_in), (C_hid,1), (C_out,C_hid), (C_out,1)
    N, C_in, H, W = x_nchw.shape
    C_hid = w1.shape[0]
    C_out = w2.shape[0]
    S = H * W

    # ---- VMEM budget -> tile sizes -------------------------------------------------
    try:
        vmem_cap = pltpu.get_tpu_info().vmem_capacity_bytes
    except Exception:
        vmem_cap = 64 * 1024 * 1024                       # assume smallest (v7x)
    # Leave >= 16 MiB headroom below physical VMEM (matters on v7x, 64 MiB/TC).
    vmem_limit = max(32 * 1024 * 1024,
                     min(64 * 1024 * 1024, vmem_cap - 16 * 1024 * 1024))

    k_slab = _choose_hidden_slab(C_hid, hid_slab)
    x_isz = x_nchw.dtype.itemsize
    w_isz = w1.dtype.itemsize
    # Rough residency: double-buffered weight slabs + per-spatial-element cost
    # (double-buffered x/out blocks, f32 accumulator, f32 hidden slab + cast copy).
    weight_bytes = 2 * (k_slab * C_in + C_out * k_slab + k_slab + C_out) * w_isz
    per_elem = 2 * C_in * x_isz + 2 * C_out * x_isz + 4 * C_out + 6 * k_slab
    budget = max(2 * 1024 * 1024, vmem_limit // 2 - weight_bytes)
    cap = budget // per_elem
    if tile_s is not None:
        cap = min(cap, int(tile_s))
    ts, S_pad = _choose_spatial_tile(S, cap)

    # ---- Free NCHW -> (N, C, S) reshape; pad only when no divisor tile exists ------
    x_cs = x_nchw.reshape(N, C_in, S)
    if S_pad != S:
        # TODO(synk): mask the ragged last spatial block in-kernel instead of this
        # extra HBM copy (only hit when H*W has no 128-aligned divisor <= cap).
        x_cs = jnp.pad(x_cs, ((0, 0), (0, 0), (0, S_pad - S)))

    grid = (N, S_pad // ts, C_hid // k_slab)
    nk = grid[2]

    # Single-buffer grid-invariant operands (b2 always; all weights when there is no
    # hidden-slab axis).  k-varying slabs keep double-buffering for DMA/compute overlap.
    def wspec(shape, imap, invariant):
        if single_buffer_consts and invariant:
            return pl.BlockSpec(shape, imap, pipeline_mode=pl.Buffered(1))
        return pl.BlockSpec(shape, imap)

    in_specs = [
        pl.BlockSpec((None, C_in, ts), lambda n, s, k: (n, 0, s)),
        wspec((k_slab, C_in),  lambda n, s, k: (k, 0), nk == 1),
        wspec((k_slab, 1),     lambda n, s, k: (k, 0), nk == 1),
        wspec((C_out, k_slab), lambda n, s, k: (0, k), nk == 1),
        wspec((C_out, 1),      lambda n, s, k: (0, 0), True),
    ]
    out_spec = pl.BlockSpec((None, C_out, ts), lambda n, s, k: (n, 0, s))

    cost = pl.CostEstimate(
        flops=2 * N * S * (C_in * C_hid + C_hid * C_out),
        transcendentals=N * S * C_hid,
        bytes_accessed=(N * S * (C_in + C_out) * x_isz
                        + (C_hid * C_in + C_out * C_hid + C_hid + C_out) * w_isz),
    )

    y = pl.pallas_call(
        mlp_kernel,
        out_shape=jax.ShapeDtypeStruct((N, C_out, S_pad), x_nchw.dtype),
        grid_spec=pltpu.PrefetchScalarGridSpec(
            num_scalar_prefetch=0,
            grid=grid,
            in_specs=in_specs,
            out_specs=out_spec,
            scratch_shapes=[pltpu.VMEM((C_out, ts), jnp.float32)],
        ),
        compiler_params=pltpu.CompilerParams(
            dimension_semantics=("parallel", "parallel", "arbitrary"),
            vmem_limit_bytes=int(vmem_limit),
        ),
        cost_estimate=cost,
    )(x_cs, w1, b1, w2, b2)

    if S_pad != S:
        y = y[:, :, :S]
    return y.reshape(N, C_out, H, W)


def init_params(key, in_features, hidden_features, out_features, dtype=jnp.float32):
    """Synthetic Conv2d(1x1)-style init, stored channels-first: W is (C_out, C_in)."""
    k1, k2, k3, k4 = jax.random.split(key, 4)
    s1 = 1.0 / math.sqrt(in_features)
    s2 = 1.0 / math.sqrt(hidden_features)
    w1 = jax.random.uniform(k1, (hidden_features, in_features), jnp.float32, -s1, s1)
    b1 = jax.random.uniform(k2, (hidden_features, 1), jnp.float32, -s1, s1)
    w2 = jax.random.uniform(k3, (out_features, hidden_features), jnp.float32, -s2, s2)
    b2 = jax.random.uniform(k4, (out_features, 1), jnp.float32, -s2, s2)
    # Weights may be stored bf16 (MXU fast path); biases stay f32 (post-accumulate add).
    # TODO(synk): fp8 weight path (+ per-channel scales folded into the f32 epilogue)
    # for v7x, whose MXU dropped int8/int4.
    return w1.astype(dtype), b1, w2.astype(dtype), b2


def mlp_reference(x_nchw, params):
    """Pure-JAX f32 reference for correctness checking."""
    w1, b1, w2, b2 = params
    x = x_nchw.astype(jnp.float32)
    h = jnp.einsum("oc,nchw->nohw", w1.astype(jnp.float32), x) + b1.reshape(1, -1, 1, 1)
    h = _gelu_exact(h)
    y = jnp.einsum("oc,nchw->nohw", w2.astype(jnp.float32), h) + b2.reshape(1, -1, 1, 1)
    return y


if __name__ == "__main__":
    key = jax.random.PRNGKey(0)
    kx, kp = jax.random.split(key)

    N, C_in, H, W = 2, 4, 16, 16      # S = 256 -> one lane-dense tile/image, no padding
    hidden = 32
    C_out = C_in                      # out_features defaults to in_features

    x = jax.random.normal(kx, (N, C_in, H, W), dtype=jnp.float32)
    params_f32 = init_params(kp, C_in, hidden, C_out, dtype=jnp.float32)
    y_ref = mlp_reference(x, params_f32)

    fwd = jax.jit(mlp_forward_nchw)
    try:
        y = jax.block_until_ready(fwd(x, params_f32))
    except Exception:
        # Fallback if this JAX build rejects pl.Buffered(1) single-buffering.
        fwd = jax.jit(functools.partial(mlp_forward_nchw, single_buffer_consts=False))
        y = jax.block_until_ready(fwd(x, params_f32))

    assert y.shape == (N, C_out, H, W)
    assert jnp.allclose(y.astype(jnp.float32), y_ref, atol=1e-5, rtol=1e-5), \
        "f32 mismatch vs reference"

    # bf16 weights + bf16 activations (memory-bound fast path): loose tolerance.
    params_bf16 = init_params(kp, C_in, hidden, C_out, dtype=jnp.bfloat16)
    y_bf16 = jax.block_until_ready(fwd(x.astype(jnp.bfloat16), params_bf16))
    assert jnp.allclose(y_bf16.astype(jnp.float32), y_ref, atol=5e-2, rtol=5e-2), \
        "bf16 mismatch vs reference"

    print("KERNEL_OK")
</pallas_src>

<mosaic_0001>
module attributes {stable_mosaic.version = 11 : i64} {
  func.func @mlp_kernel(%arg0: i32, %arg1: i32, %arg2: i32, %arg3: memref<1x4x256xf32, #tpu.memory_space<vmem>>, %arg4: memref<32x4xf32, #tpu.memory_space<vmem>>, %arg5: memref<32x1xf32, #tpu.memory_space<vmem>>, %arg6: memref<4x32xf32, #tpu.memory_space<vmem>>, %arg7: memref<4x1xf32, #tpu.memory_space<vmem>>, %arg8: memref<1x4x256xf32, #tpu.memory_space<vmem>>, %arg9: memref<4x256xf32, #tpu.memory_space<vmem>>) attributes {dimension_semantics = [#tpu.dimension_semantics<parallel>, #tpu.dimension_semantics<parallel>, #tpu.dimension_semantics<arbitrary>], iteration_bounds = array<i64: 2, 1, 1>, scalar_prefetch = 0 : i64, scratch_operands = 1 : i64, tpu.core_type = #tpu.core_type<tc>, window_params = [{transform_indices = @transform_0, window_bounds = array<i64: 1, 4, 256>}, {pipeline_mode = #tpu.pipeline_mode<synchronous>, transform_indices = @transform_1, window_bounds = array<i64: 32, 4>}, {pipeline_mode = #tpu.pipeline_mode<synchronous>, transform_indices = @transform_2, window_bounds = array<i64: 32, 1>}, {pipeline_mode = #tpu.pipeline_mode<synchronous>, transform_indices = @transform_3, window_bounds = array<i64: 4, 32>}, {pipeline_mode = #tpu.pipeline_mode<synchronous>, transform_indices = @transform_4, window_bounds = array<i64: 4, 1>}, {transform_indices = @transform_5, window_bounds = array<i64: 1, 4, 256>}]} {
    %c0_i32 = arith.constant 0 : i32
    %0 = arith.cmpi eq, %arg2, %c0_i32 : i32
    %1 = arith.extui %0 : i1 to i32
    %c0_i32_0 = arith.constant 0 : i32
    %2 = arith.cmpi ne, %1, %c0_i32_0 : i32
    scf.if %2 {
      %cst_19 = arith.constant 0.000000e+00 : f32
      %26 = vector.broadcast %cst_19 : f32 to vector<4x256xf32>
      %c0_20 = arith.constant 0 : index
      %c0_21 = arith.constant 0 : index
      %27 = vector.load %arg9[%c0_20, %c0_21] : memref<4x256xf32, #tpu.memory_space<vmem>>, vector<4x256xf32>
      tpu.vector_store %arg9[%c0_20, %c0_21], %26 {strides = array<i32>} : memref<4x256xf32, #tpu.memory_space<vmem>>, vector<4x256xf32>,
    } else {
    }
    %c0 = arith.constant 0 : index
    %c0_1 = arith.constant 0 : index
    %c0_2 = arith.constant 0 : index
    %3 = vector.load %arg3[%c0, %c0_1, %c0_2] : memref<1x4x256xf32, #tpu.memory_space<vmem>>, vector<1x4x256xf32>
    %4 = vector.shape_cast %3 : vector<1x4x256xf32> to vector<4x256xf32>
    %c0_3 = arith.constant 0 : index
    %c0_4 = arith.constant 0 : index
    %5 = vector.load %arg4[%c0_3, %c0_4] : memref<32x4xf32, #tpu.memory_space<vmem>>, vector<32x4xf32>
    %cst = arith.constant dense<0.000000e+00> : vector<32x256xf32>
    %6 = tpu.matmul %5, %4, %cst {dimension_numbers = #tpu.dot_dimension_numbers<[1], [0], [0], [1], [0, 0, 1, 1], [], []>} : vector<32x4xf32>, vector<4x256xf32>, vector<32x256xf32> -> vector<32x256xf32>
    %c0_5 = arith.constant 0 : index
    %c0_6 = arith.constant 0 : index
    %7 = vector.load %arg5[%c0_5, %c0_6] : memref<32x1xf32, #tpu.memory_space<vmem>>, vector<32x1xf32>
    %8 = vector.broadcast %7 : vector<32x1xf32> to vector<32x256xf32>
    %9 = arith.addf %6, %8 : vector<32x256xf32>
    %cst_7 = arith.constant 5.000000e-01 : f32
    %10 = vector.broadcast %cst_7 : f32 to vector<32x256xf32>
    %11 = arith.mulf %10, %9 : vector<32x256xf32>
    %cst_8 = arith.constant 0.707106769 : f32
    %12 = vector.broadcast %cst_8 : f32 to vector<32x256xf32>
    %13 = arith.mulf %9, %12 : vector<32x256xf32>
    %14 = math.erf %13 : vector<32x256xf32>
    %cst_9 = arith.constant 1.000000e+00 : f32
    %15 = vector.broadcast %cst_9 : f32 to vector<32x256xf32>
    %16 = arith.addf %15, %14 : vector<32x256xf32>
    %17 = arith.mulf %11, %16 : vector<32x256xf32>
    %c0_10 = arith.constant 0 : index
    %c0_11 = arith.constant 0 : index
    %18 = vector.load %arg9[%c0_10, %c0_11] : memref<4x256xf32, #tpu.memory_space<vmem>>, vector<4x256xf32>
    %c0_12 = arith.constant 0 : index
    %c0_13 = arith.constant 0 : index
    %19 = vector.load %arg6[%c0_12, %c0_13] : memref<4x32xf32, #tpu.memory_space<vmem>>, vector<4x32xf32>
    %cst_14 = arith.constant dense<0.000000e+00> : vector<4x256xf32>
    %20 = tpu.matmul %19, %17, %cst_14 {dimension_numbers = #tpu.dot_dimension_numbers<[1], [0], [0], [1], [0, 0, 1, 1], [], []>} : vector<4x32xf32>, vector<32x256xf32>, vector<4x256xf32> -> vector<4x256xf32>
    %21 = arith.addf %18, %20 : vector<4x256xf32>
    %c0_15 = arith.constant 0 : index
    %c0_16 = arith.constant 0 : index
    %22 = vector.load %arg9[%c0_15, %c0_16] : memref<4x256xf32, #tpu.memory_space<vmem>>, vector<4x256xf32>
    tpu.vector_store %arg9[%c0_15, %c0_16], %21 {strides = array<i32>} : memref<4x256xf32, #tpu.memory_space<vmem>>, vector<4x256xf32>,
    %c0_i32_17 = arith.constant 0 : i32
    %23 = arith.cmpi eq, %arg2, %c0_i32_17 : i32
    %24 = arith.extui %23 : i1 to i32
    %c0_i32_18 = arith.constant 0 : i32
    %25 = arith.cmpi ne, %24, %c0_i32_18 : i32
    scf.if %25 {
      %c0_19 = arith.constant 0 : index
      %c0_20 = arith.constant 0 : index
      %26 = vector.load %arg9[%c0_19, %c0_20] : memref<4x256xf32, #tpu.memory_space<vmem>>, vector<4x256xf32>
      %c0_21 = arith.constant 0 : index
      %c0_22 = arith.constant 0 : index
      %27 = vector.load %arg7[%c0_21, %c0_22] : memref<4x1xf32, #tpu.memory_space<vmem>>, vector<4x1xf32>
      %28 = vector.broadcast %27 : vector<4x1xf32> to vector<4x256xf32>
      %29 = arith.addf %26, %28 : vector<4x256xf32>
      %c0_23 = arith.constant 0 : index
      %c0_24 = arith.constant 0 : index
      %c0_25 = arith.constant 0 : index
      %30 = vector.load %arg8[%c0_23, %c0_24, %c0_25] : memref<1x4x256xf32, #tpu.memory_space<vmem>>, vector<1x4x256xf32>
      %31 = vector.shape_cast %30 : vector<1x4x256xf32> to vector<4x256xf32>
      %32 = vector.shape_cast %29 : vector<4x256xf32> to vector<1x4x256xf32>
      tpu.vector_store %arg8[%c0_23, %c0_24, %c0_25], %32 {strides = array<i32>} : memref<1x4x256xf32, #tpu.memory_space<vmem>>, vector<1x4x256xf32>,
    } else {
    }
    return
  }
  func.func @transform_0(%arg0: i32, %arg1: i32, %arg2: i32) -> (i32, i32, i32) {
    %c0_i32 = arith.constant 0 : i32
    %c0_i32_0 = arith.constant 0 : i32
    return %arg0, %c0_i32, %arg1 : i32, i32, i32
  }
  func.func @transform_1(%arg0: i32, %arg1: i32, %arg2: i32) -> (i32, i32) {
    %c0_i32 = arith.constant 0 : i32
    %c0_i32_0 = arith.constant 0 : i32
    return %arg2, %c0_i32 : i32, i32
  }
  func.func @transform_2(%arg0: i32, %arg1: i32, %arg2: i32) -> (i32, i32) {
    %c0_i32 = arith.constant 0 : i32
    %c0_i32_0 = arith.constant 0 : i32
    return %arg2, %c0_i32 : i32, i32
  }
  func.func @transform_3(%arg0: i32, %arg1: i32, %arg2: i32) -> (i32, i32) {
    %c0_i32 = arith.constant 0 : i32
    %c0_i32_0 = arith.constant 0 : i32
    return %c0_i32, %arg2 : i32, i32
  }
  func.func @transform_4(%arg0: i32, %arg1: i32, %arg2: i32) -> (i32, i32) {
    %c0_i32 = arith.constant 0 : i32
    %c0_i32_0 = arith.constant 0 : i32
    %c0_i32_1 = arith.constant 0 : i32
    return %c0_i32, %c0_i32_0 : i32, i32
  }
  func.func @transform_5(%arg0: i32, %arg1: i32, %arg2: i32) -> (i32, i32, i32) {
    %c0_i32 = arith.constant 0 : i32
    %c0_i32_0 = arith.constant 0 : i32
    return %arg0, %c0_i32, %arg1 : i32, i32, i32
  }
}

module attributes {stable_mosaic.version = 11 : i64} {
  func.func @mlp_kernel(%arg0: i32, %arg1: i32, %arg2: i32, %arg3: memref<1x4x256xf32, #tpu.memory_space<vmem>>, %arg4: memref<32x4xf32, #tpu.memory_space<vmem>>, %arg5: memref<32x1xf32, #tpu.memory_space<vmem>>, %arg6: memref<4x32xf32, #tpu.memory_space<vmem>>, %arg7: memref<4x1xf32, #tpu.memory_space<vmem>>, %arg8: memref<1x4x256xf32, #tpu.memory_space<vmem>>, %arg9: memref<4x256xf32, #tpu.memory_space<vmem>>) attributes {dimension_semantics = [#tpu.dimension_semantics<parallel>, #tpu.dimension_semantics<parallel>, #tpu.dimension_semantics<arbitrary>], iteration_bounds = array<i64: 2, 1, 1>, scalar_prefetch = 0 : i64, scratch_operands = 1 : i64, tpu.core_type = #tpu.core_type<tc>, window_params = [{transform_indices = @transform_0, window_bounds = array<i64: 1, 4, 256>}, {transform_indices = @transform_1, window_bounds = array<i64: 32, 4>}, {transform_indices = @transform_2, window_bounds = array<i64: 32, 1>}, {transform_indices = @transform_3, window_bounds = array<i64: 4, 32>}, {pipeline_mode = #tpu.pipeline_mode<synchronous>, transform_indices = @transform_4, window_bounds = array<i64: 4, 1>}, {transform_indices = @transform_5, window_bounds = array<i64: 1, 4, 256>}]} {
    %c0_i32 = arith.constant 0 : i32
    %0 = arith.cmpi eq, %arg2, %c0_i32 : i32
    %1 = arith.extui %0 : i1 to i32
    %c0_i32_0 = arith.constant 0 : i32
    %2 = arith.cmpi ne, %1, %c0_i32_0 : i32
    scf.if %2 {
      %cst_19 = arith.constant 0.000000e+00 : f32
      %26 = vector.broadcast %cst_19 : f32 to vector<4x256xf32>
      %c0_20 = arith.constant 0 : index
      %c0_21 = arith.constant 0 : index
      %27 = vector.load %arg9[%c0_20, %c0_21] : memref<4x256xf32, #tpu.memory_space<vmem>>, vector<4x256xf32>
      tpu.vector_store %arg9[%c0_20, %c0_21], %26 {strides = array<i32>} : memref<4x256xf32, #tpu.memory_space<vmem>>, vector<4x256xf32>,
    } else {
    }
    %c0 = arith.constant 0 : index
    %c0_1 = arith.constant 0 : index
    %c0_2 = arith.constant 0 : index
    %3 = vector.load %arg3[%c0, %c0_1, %c0_2] : memref<1x4x256xf32, #tpu.memory_space<vmem>>, vector<1x4x256xf32>
    %4 = vector.shape_cast %3 : vector<1x4x256xf32> to vector<4x256xf32>
    %c0_3 = arith.constant 0 : index
    %c0_4 = arith.constant 0 : index
    %5 = vector.load %arg4[%c0_3, %c0_4] : memref<32x4xf32, #tpu.memory_space<vmem>>, vector<32x4xf32>
    %cst = arith.constant dense<0.000000e+00> : vector<32x256xf32>
    %6 = tpu.matmul %5, %4, %cst {dimension_numbers = #tpu.dot_dimension_numbers<[1], [0], [0], [1], [0, 0, 1, 1], [], []>} : vector<32x4xf32>, vector<4x256xf32>, vector<32x256xf32> -> vector<32x256xf32>
    %c0_5 = arith.constant 0 : index
    %c0_6 = arith.constant 0 : index
    %7 = vector.load %arg5[%c0_5, %c0_6] : memref<32x1xf32, #tpu.memory_space<vmem>>, vector<32x1xf32>
    %8 = vector.broadcast %7 : vector<32x1xf32> to vector<32x256xf32>
    %9 = arith.addf %6, %8 : vector<32x256xf32>
    %cst_7 = arith.constant 5.000000e-01 : f32
    %10 = vector.broadcast %cst_7 : f32 to vector<32x256xf32>
    %11 = arith.mulf %10, %9 : vector<32x256xf32>
    %cst_8 = arith.constant 0.707106769 : f32
    %12 = vector.broadcast %cst_8 : f32 to vector<32x256xf32>
    %13 = arith.mulf %9, %12 : vector<32x256xf32>
    %14 = math.erf %13 : vector<32x256xf32>
    %cst_9 = arith.constant 1.000000e+00 : f32
    %15 = vector.broadcast %cst_9 : f32 to vector<32x256xf32>
    %16 = arith.addf %15, %14 : vector<32x256xf32>
    %17 = arith.mulf %11, %16 : vector<32x256xf32>
    %c0_10 = arith.constant 0 : index
    %c0_11 = arith.constant 0 : index
    %18 = vector.load %arg9[%c0_10, %c0_11] : memref<4x256xf32, #tpu.memory_space<vmem>>, vector<4x256xf32>
    %c0_12 = arith.constant 0 : index
    %c0_13 = arith.constant 0 : index
    %19 = vector.load %arg6[%c0_12, %c0_13] : memref<4x32xf32, #tpu.memory_space<vmem>>, vector<4x32xf32>
    %cst_14 = arith.constant dense<0.000000e+00> : vector<4x256xf32>
    %20 = tpu.matmul %19, %17, %cst_14 {dimension_numbers = #tpu.dot_dimension_numbers<[1], [0], [0], [1], [0, 0, 1, 1], [], []>} : vector<4x32xf32>, vector<32x256xf32>, vector<4x256xf32> -> vector<4x256xf32>
    %21 = arith.addf %18, %20 : vector<4x256xf32>
    %c0_15 = arith.constant 0 : index
    %c0_16 = arith.constant 0 : index
    %22 = vector.load %arg9[%c0_15, %c0_16] : memref<4x256xf32, #tpu.memory_space<vmem>>, vector<4x256xf32>
    tpu.vector_store %arg9[%c0_15, %c0_16], %21 {strides = array<i32>} : memref<4x256xf32, #tpu.memory_space<vmem>>, vector<4x256xf32>,
    %c0_i32_17 = arith.constant 0 : i32
    %23 = arith.cmpi eq, %arg2, %c0_i32_17 : i32
    %24 = arith.extui %23 : i1 to i32
    %c0_i32_18 = arith.constant 0 : i32
    %25 = arith.cmpi ne, %24, %c0_i32_18 : i32
    scf.if %25 {
      %c0_19 = arith.constant 0 : index
      %c0_20 = arith.constant 0 : index
      %26 = vector.load %arg9[%c0_19, %c0_20] : memref<4x256xf32, #tpu.memory_space<vmem>>, vector<4x256xf32>
      %c0_21 = arith.constant 0 : index
      %c0_22 = arith.constant 0 : index
      %27 = vector.load %arg7[%c0_21, %c0_22] : memref<4x1xf32, #tpu.memory_space<vmem>>, vector<4x1xf32>
      %28 = vector.broadcast %27 : vector<4x1xf32> to vector<4x256xf32>
      %29 = arith.addf %26, %28 : vector<4x256xf32>
      %c0_23 = arith.constant 0 : index
      %c0_24 = arith.constant 0 : index
      %c0_25 = arith.constant 0 : index
      %30 = vector.load %arg8[%c0_23, %c0_24, %c0_25] : memref<1x4x256xf32, #tpu.memory_space<vmem>>, vector<1x4x256xf32>
      %31 = vector.shape_cast %30 : vector<1x4x256xf32> to vector<4x256xf32>
      %32 = vector.shape_cast %29 : vector<4x256xf32> to vector<1x4x256xf32>
      tpu.vector_store %arg8[%c0_23, %c0_24, %c0_25], %32 {strides = array<i32>} : memref<1x4x256xf32, #tpu.memory_space<vmem>>, vector<1x4x256xf32>,
    } else {
    }
    return
  }
  func.func @transform_0(%arg0: i32, %arg1: i32, %arg2: i32) -> (i32, i32, i32) {
    %c0_i32 = arith.constant 0 : i32
    %c0_i32_0 = arith.constant 0 : i32
    return %arg0, %c0_i32, %arg1 : i32, i32, i32
  }
  func.func @transform_1(%arg0: i32, %arg1: i32, %arg2: i32) -> (i32, i32) {
    %c0_i32 = arith.constant 0 : i32
    %c0_i32_0 = arith.constant 0 : i32
    return %arg2, %c0_i32 : i32, i32
  }
  func.func @transform_2(%arg0: i32, %arg1: i32, %arg2: i32) -> (i32, i32) {
    %c0_i32 = arith.constant 0 : i32
    %c0_i32_0 = arith.constant 0 : i32
    return %arg2, %c0_i32 : i32, i32
  }
  func.func @transform_3(%arg0: i32, %arg1: i32, %arg2: i32) -> (i32, i32) {
    %c0_i32 = arith.constant 0 : i32
    %c0_i32_0 = arith.constant 0 : i32
    return %c0_i32, %arg2 : i32, i32
  }
  func.func @transform_4(%arg0: i32, %arg1: i32, %arg2: i32) -> (i32, i32) {
    %c0_i32 = arith.constant 0 : i32
    %c0_i32_0 = arith.constant 0 : i32
    %c0_i32_1 = arith.constant 0 : i32
    return %c0_i32, %c0_i32_0 : i32, i32
  }
  func.func @transform_5(%arg0: i32, %arg1: i32, %arg2: i32) -> (i32, i32, i32) {
    %c0_i32 = arith.constant 0 : i32
    %c0_i32_0 = arith.constant 0 : i32
    return %arg0, %c0_i32, %arg1 : i32, i32, i32
  }
}

</mosaic_0001>

<bundles_post_ra>
// kernel: mlp_forward_nchw.1
= control target key start
LH: loop header
LB: loop body
LE: loop exit
PB: predicated region body
PF: predicated region fallthrough
CT: control target
= control target key end

     0   :  { %s886_s18 = smov 0   ;;  %s888_s19 = smov 0   ;;  %s956_s0 = inlined_call_operand.vmem [shape: f32[2,4,256], index: 0, kind: input, shape index: {}]   ;;  %s957_s1 = inlined_call_operand.vmem [shape: f32[32,4], index: 1, kind: input, shape index: {}]   ;;  %s958_s2 = inlined_call_operand.vmem [shape: f32[32,1], index: 2, kind: input, shape index: {}]   ;;  %s959_s3 = inlined_call_operand.vmem [shape: f32[4,32], index: 3, kind: input, shape index: {}]   ;;  %s960_s4 = inlined_call_operand.vmem [shape: f32[4,1], index: 4, kind: input, shape index: {}]   ;;  %s961_s5 = inlined_call_operand.vmem [shape: f32[2,4,256], index: 5, kind: output, shape index: {}]  }
   0x1   :  { %s890_s20 = smov 0  }
   0x2 LB: > { %s34_s21 = sadd.s32 1, %s847_s19  ;;  %p759_p0 = scmp.ge.s32.totalorder %s851_s20, 1  ;;  %s851_s20 = sphi %s890_s20, %s15_s20   ;;  %s847_s19 = sphi %s888_s19, %s963_s19   ;;  %s843_s18 = sphi %s886_s18, %s962_s18  }
   0x3   : > { %p36_p1 = scmp.ge.s32.totalorder %s34_s21, 2  ;;  %p246_p2 = scmp.lt.s32.totalorder %s851_s20, 3 }
   0x5   : > { %s965_s21 = smov (%p36_p1, %s34_s21), 0  ;;  %p247_p3 = pnand %p759_p0, %p246_p2 }
   0x6   : > { %p297_p4 = scmp.lt.s32.totalorder (!%p247_p3), %s843_s18, 1  ;;  %v853_v0 = vmov (!%p247_p3), 0.0   ;;  %v342_v1 = vld [vmem:[%s958_s2] sm:$0xff] (!%p247_p3)  ;;  %v854_v2 = vmov (!%p247_p3), 0   ;;  %v344_v3 = vld [vmem:[%s958_s2 + $0x10] sm:$0xff] (!%p247_p3)  ;;  %v343_v4 = vld [vmem:[%s958_s2 + $0x8] sm:$0xff] (!%p247_p3) }
   0x7   : > { %250 = sbr.rel (%p247_p3) target bundleno = 490 (0x1ea), region = 40  ;;  %450 = vmatprep.mubr.f32.mxu0 (!%p247_p3), %v853_v0  ;;  %585 = vmatprep.mubr.f32.mxu1 (!%p247_p3), %v853_v0  ;;  %v345_v5 = vld [vmem:[%s958_s2 + $0x18] sm:$0xff] (!%p247_p3)  ;;  %vm381_vm0 = vcmask (!%p247_p3), 1043456   ;;  %v338_v8 = vld [vmem:[%s957_s1] sm:$0xff] (!%p247_p3)  ;;  %vm368_vm1 = vcmask (!%p247_p3), 31744   ;;  %v339_v10 = vld [vmem:[%s957_s1 + $0x8] sm:$0xff] (!%p247_p3) }
   0x8   : > { %810 = vset.pattern.permute.xlu0 (!%p247_p3), %v854_v2  ;;  %811 = vset.pattern.permute.xlu1 (!%p247_p3), %v854_v2  ;;  %v602_v9 = vld [vmem:[%s960_s4] sm:$0xf] (!%p247_p3)  ;;  %v340_v11 = vld [vmem:[%s957_s1 + $0x10] sm:$0xff] (!%p247_p3)  ;;  %v341_v12 = vld [vmem:[%s957_s1 + $0x18] sm:$0xff] (!%p247_p3)  ;;  %vm517_vm2 = vcmask (!%p247_p3), 261120  }
   0x9   : > { %348 = vperm.xlu0 (!%p247_p3), %810, %v342_v1   ;;  %358 = vperm.xlu1 (!%p247_p3), %811, %v344_v3  }
   0xd   : > { %353 = vperm.xlu0 (!%p247_p3), %810, %v343_v4   ;;  %363 = vperm.xlu1 (!%p247_p3), %811, %v345_v5  }
   0xe   : > { %s967_s18 = smov (!%p297_p4, %s843_s18), 1 }
   0xf   : > { %s773_s26 = sshll.u32 %s967_s18, 3 }
  0x10   : > { %s304_s8 = scalar_lea.vmem %s956_s0, %s773_s26  ;;  %s330_s28 = scalar_lea.vmem %s961_s5, %s773_s26 }
  0x11   : > { %v337_v6 = vld [vmem:[%s304_s8] sm:$0xff]  ;;  %605 = vperm.xlu0 %810, %v602_v9  }
  0x12   : > { %v367_v7 = vcombine.high %v337_v6, %v337_v6 }
  0x14   : > { %764 = vmatprep.subr.msk.mxu0 %vm381_vm0, %v367_v7 }
  0x15   : > { %765 = vmatpush1.msk.msra.mxu0 %vm381_vm0, %v337_v6 }
  0x16   : > { %766 = vmatmul.mubr.msk.f32.vlgmr.msra.gmra.mrb[0].mxu0 %vm368_vm1, %v338_v8 }
  0x17   : > { %456 = vmatprep.mubr.f32.mxu0 %v853_v0 }
  0x1a   : > { %767 = vmatmul.mubr.msk.f32.gmra.mrb[2].mxu0 %vm368_vm1, %v339_v10 }
  0x1b   : > { %462 = vmatprep.mubr.f32.mxu0 %v853_v0 }
  0x1e   : > { %768 = vmatmul.mubr.msk.f32.gmra.mrb[4].mxu0 %vm368_vm1, %v340_v11 }
  0x1f   : > { %468 = vmatprep.mubr.f32.mxu0 %v853_v0 }
  0x22   : > { %769 = vmatmul.mubr.msk.f32.gmra.mrb[6].mxu0 %vm368_vm1, %v341_v12 }
  0x88   : > { %v349_v13 = vpop.permute.xlu0 %348  ;;  %v359_v24 = vpop.permute.xlu1 %358 }
  0x8c   : > { %v354_v19 = vpop.permute.xlu0 %353  ;;  %v364_v33 = vpop.permute.xlu1 %363 }
  0xe9   : > { %v452_v14 = vpop.f32.mrb[0].mxu0 }
  0xea   : > { %v453_v15 = vadd.f32 %v452_v14, %v349_v13  ;;  %v454_v16 = vpop.f32.mrb[1].mxu0  ;;  %v855_v14 = vmov 839922192  }
  0xeb   : > { %v455_v17 = vadd.f32 %v454_v16, %v349_v13  ;;  %v516_v13 = vld [vmem:[%s959_s3] sm:$0xf]  ;;  %v610_v16 = vlaneseq }
  0xec   : > { %v483_v18 = vmul.f32 0.70710677, %v453_v15  ;;  %v475_v47 = vmul.f32 0.5, %v453_v15  ;;  %v608_v15 = vunpack.c.l.s4 %v855_v14 }
  0xed   : > { %v484_v20 = vmul.f32 0.70710677, %v455_v17  ;;  %v458_v21 = vpop.f32.mrb[2].mxu0  ;;  %v476_v50 = vmul.f32 0.5, %v455_v17 }
  0xee   : > { %813 = verf.f32 %v483_v18  ;;  %v459_v22 = vadd.f32 %v458_v21, %v354_v19  ;;  %v460_v23 = vpop.f32.mrb[3].mxu0  ;;  %v609_v17 = vunpack.c.0.s8 %v608_v15  ;;  %v611_v18 = vshrl.u32 %v610_v16, 7 }
  0xef   : > { %815 = verf.f32 %v484_v20  ;;  %v461_v25 = vadd.f32 %v460_v23, %v354_v19  ;;  %v606_v20 = vpop.permute.xlu0 %605 }
  0xf0   : > { %v485_v26 = vmul.f32 0.70710677, %v459_v22  ;;  %v477_v48 = vmul.f32 0.5, %v459_v22  ;;  %v612_v19 = vsub.s32 %v609_v17, %v611_v18 }
  0xf1   : > { %v486_v27 = vmul.f32 0.70710677, %v461_v25  ;;  %v464_v28 = vpop.f32.mrb[4].mxu0  ;;  %v478_v51 = vmul.f32 0.5, %v461_v25 }
  0xf2   : > { %817 = verf.f32 %v485_v26  ;;  %v465_v29 = vadd.f32 %v464_v28, %v359_v24  ;;  %v466_v30 = vpop.f32.mrb[5].mxu0  ;;  %v613_v23 = vrot.slane %v606_v20, %v612_v19 }
  0xf3   : > { %819 = verf.f32 %v486_v27  ;;  %v467_v31 = vadd.f32 %v466_v30, %v359_v24 }
  0xf4   : > { %v487_v32 = vmul.f32 0.70710677, %v465_v29  ;;  %v479_v1 = vmul.f32 0.5, %v465_v29 }
  0xf5   : > { %v488_v34 = vmul.f32 0.70710677, %v467_v31  ;;  %v470_v35 = vpop.f32.mrb[6].mxu0  ;;  %v480_v4 = vmul.f32 0.5, %v467_v31 }
  0xf6   : > { %821 = verf.f32 %v487_v32  ;;  %v471_v36 = vadd.f32 %v470_v35, %v364_v33  ;;  %v472_v37 = vpop.f32.mrb[7].mxu0 }
  0xf7   : > { %823 = verf.f32 %v488_v34  ;;  %v473_v38 = vadd.f32 %v472_v37, %v364_v33 }
  0xf8   : > { %v814_v39 = vpop.eup %813  ;;  %v489_v40 = vmul.f32 0.70710677, %v471_v36  ;;  %v481_v2 = vmul.f32 0.5, %v471_v36 }
  0xf9   : > { %v816_v41 = vpop.eup %815  ;;  %v490_v42 = vmul.f32 0.70710677, %v473_v38  ;;  %v499_v43 = vadd.f32 1.0, %v814_v39  ;;  %v482_v5 = vmul.f32 0.5, %v473_v38 }
  0xfa   : > { %825 = verf.f32 %v489_v40  ;;  %v500_v45 = vadd.f32 1.0, %v816_v41 }
  0xfb   : > { %827 = verf.f32 %v490_v42  ;;  %v507_v53 = vmul.f32 %v499_v43, %v475_v47 }
  0xfc   : > { %v818_v44 = vpop.eup %817  ;;  %v508_v56 = vmul.f32 %v500_v45, %v476_v50 }
  0xfd   : > { %v820_v46 = vpop.eup %819  ;;  %v501_v49 = vadd.f32 1.0, %v818_v44 }
  0xfe   : > { %v502_v52 = vadd.f32 1.0, %v820_v46 }
  0xff   : > { %v509_v54 = vmul.f32 %v501_v49, %v477_v48 }
 0x100   : > { %v822_v55 = vpop.eup %821  ;;  %v510_v57 = vmul.f32 %v502_v52, %v478_v51 }
 0x101   : > { %v824_v58 = vpop.eup %823  ;;  %v777_v59 = vpack.c.bf16 %v509_v54, %v507_v53  ;;  %v503_v61 = vadd.f32 1.0, %v822_v55 }
 0x102   : > { %v775_v60 = vpack.c.bf16 %v510_v57, %v508_v56  ;;  %v504_v63 = vadd.f32 1.0, %v824_v58 }
 0x103   : > { %v511_v7 = vmul.f32 %v503_v61, %v479_v1 }
 0x104   : > { %v826_v62 = vpop.eup %825  ;;  %776 = vmatprep.subr.bf16.mxu1 %v775_v60  ;;  %v512_v9 = vmul.f32 %v504_v63, %v480_v4 }
 0x105   : > { %v828_v0 = vpop.eup %827  ;;  %v505_v3 = vadd.f32 1.0, %v826_v62  ;;  %778 = vmatpush1.bf16.msra.mxu1 %v777_v59 }
 0x106   : > { %v506_v6 = vadd.f32 1.0, %v828_v0 }
 0x107   : > { %v513_v8 = vmul.f32 %v505_v3, %v481_v2 }
 0x108   : > { %v514_v10 = vmul.f32 %v506_v6, %v482_v5 }
 0x109   : > { %v781_v11 = vpack.c.bf16 %v513_v8, %v511_v7 }
 0x10a   : > { %v779_v12 = vpack.c.bf16 %v514_v10, %v512_v9 }
 0x10c   : > { %780 = vmatprep.subr.bf16.mxu1 %v779_v12 }
 0x10d   : > { %782 = vmatpush1.bf16.msra.mxu1 %v781_v11 }
 0x110   : > { %770 = vmatmul.mubr.msk.f32.vlgmr.msra.gmra.mrb[0].mxu1 %vm517_vm2, %v516_v13 }
 0x1e3   : > { %v587_v21 = vpop.f32.mrb[0].mxu1 }
 0x1e4   : > { %v589_v22 = vpop.f32.mrb[1].mxu1 }
 0x1e5   : > { %v594_v24 = vcombine.low %v587_v21, %v589_v22 }
 0x1e7   : > { %v615_v25 = vadd.f32 %v613_v23, %v594_v24 }
 0x1e9   : > { %616 = vst [vmem:[%s330_s28] sm:$0xff] %v615_v25 }
 0x1ea PF: > { %s15_s20 = sadd.s32 1, %s851_s20   ;;  %s962_s18 = smov %s847_s19 }
 0x1eb   : > { %p12_p5 = scmp.ge.s32.totalorder %s15_s20, 4   ;;  %s963_s19 = smov %s965_s21 }
 0x1ed   :  { %14 = sbr.rel (!%p12_p5) target bundleno = 2 (0x2), region = 87 }

// kernel: mlp_forward_nchw.1
= control target key start
LH: loop header
LB: loop body
LE: loop exit
PB: predicated region body
PF: predicated region fallthrough
CT: control target
= control target key end

     0   :  { %s886_s18 = smov 0   ;;  %s888_s19 = smov 0   ;;  %s956_s0 = inlined_call_operand.vmem [shape: f32[2,4,256], index: 0, kind: input, shape index: {}]   ;;  %s957_s1 = inlined_call_operand.vmem [shape: f32[32,4], index: 1, kind: input, shape index: {}]   ;;  %s958_s2 = inlined_call_operand.vmem [shape: f32[32,1], index: 2, kind: input, shape index: {}]   ;;  %s959_s3 = inlined_call_operand.vmem [shape: f32[4,32], index: 3, kind: input, shape index: {}]   ;;  %s960_s4 = inlined_call_operand.vmem [shape: f32[4,1], index: 4, kind: input, shape index: {}]   ;;  %s961_s5 = inlined_call_operand.vmem [shape: f32[2,4,256], index: 5, kind: output, shape index: {}]  }
   0x1   :  { %s890_s20 = smov 0  }
   0x2 LB: > { %s34_s21 = sadd.s32 1, %s847_s19  ;;  %p759_p0 = scmp.ge.s32.totalorder %s851_s20, 1  ;;  %s851_s20 = sphi %s890_s20, %s15_s20   ;;  %s847_s19 = sphi %s888_s19, %s963_s19   ;;  %s843_s18 = sphi %s886_s18, %s962_s18  }
   0x3   : > { %p36_p1 = scmp.ge.s32.totalorder %s34_s21, 2  ;;  %p246_p2 = scmp.lt.s32.totalorder %s851_s20, 3 }
   0x5   : > { %s965_s21 = smov (%p36_p1, %s34_s21), 0  ;;  %p247_p3 = pnand %p759_p0, %p246_p2 }
   0x6   : > { %p297_p4 = scmp.lt.s32.totalorder (!%p247_p3), %s843_s18, 1  ;;  %v853_v0 = vmov (!%p247_p3), 0.0   ;;  %v342_v1 = vld [vmem:[%s958_s2] sm:$0xff] (!%p247_p3)  ;;  %v854_v2 = vmov (!%p247_p3), 0   ;;  %v344_v3 = vld [vmem:[%s958_s2 + $0x10] sm:$0xff] (!%p247_p3)  ;;  %v343_v4 = vld [vmem:[%s958_s2 + $0x8] sm:$0xff] (!%p247_p3) }
   0x7   : > { %250 = sbr.rel (%p247_p3) target bundleno = 490 (0x1ea), region = 40  ;;  %450 = vmatprep.mubr.f32.mxu0 (!%p247_p3), %v853_v0  ;;  %585 = vmatprep.mubr.f32.mxu1 (!%p247_p3), %v853_v0  ;;  %v345_v5 = vld [vmem:[%s958_s2 + $0x18] sm:$0xff] (!%p247_p3)  ;;  %vm381_vm0 = vcmask (!%p247_p3), 1043456   ;;  %v338_v8 = vld [vmem:[%s957_s1] sm:$0xff] (!%p247_p3)  ;;  %vm368_vm1 = vcmask (!%p247_p3), 31744   ;;  %v339_v10 = vld [vmem:[%s957_s1 + $0x8] sm:$0xff] (!%p247_p3) }
   0x8   : > { %810 = vset.pattern.permute.xlu0 (!%p247_p3), %v854_v2  ;;  %811 = vset.pattern.permute.xlu1 (!%p247_p3), %v854_v2  ;;  %v602_v9 = vld [vmem:[%s960_s4] sm:$0xf] (!%p247_p3)  ;;  %v340_v11 = vld [vmem:[%s957_s1 + $0x10] sm:$0xff] (!%p247_p3)  ;;  %v341_v12 = vld [vmem:[%s957_s1 + $0x18] sm:$0xff] (!%p247_p3)  ;;  %vm517_vm2 = vcmask (!%p247_p3), 261120  }
   0x9   : > { %348 = vperm.xlu0 (!%p247_p3), %810, %v342_v1   ;;  %358 = vperm.xlu1 (!%p247_p3), %811, %v344_v3  }
   0xd   : > { %353 = vperm.xlu0 (!%p247_p3), %810, %v343_v4   ;;  %363 = vperm.xlu1 (!%p247_p3), %811, %v345_v5  }
   0xe   : > { %s967_s18 = smov (!%p297_p4, %s843_s18), 1 }
   0xf   : > { %s773_s26 = sshll.u32 %s967_s18, 3 }
  0x10   : > { %s304_s8 = scalar_lea.vmem %s956_s0, %s773_s26  ;;  %s330_s28 = scalar_lea.vmem %s961_s5, %s773_s26 }
  0x11   : > { %v337_v6 = vld [vmem:[%s304_s8] sm:$0xff]  ;;  %605 = vperm.xlu0 %810, %v602_v9  }
  0x12   : > { %v367_v7 = vcombine.high %v337_v6, %v337_v6 }
  0x14   : > { %764 = vmatprep.subr.msk.mxu0 %vm381_vm0, %v367_v7 }
  0x15   : > { %765 = vmatpush1.msk.msra.mxu0 %vm381_vm0, %v337_v6 }
  0x16   : > { %766 = vmatmul.mubr.msk.f32.vlgmr.msra.gmra.mrb[0].mxu0 %vm368_vm1, %v338_v8 }
  0x17   : > { %456 = vmatprep.mubr.f32.mxu0 %v853_v0 }
  0x1a   : > { %767 = vmatmul.mubr.msk.f32.gmra.mrb[2].mxu0 %vm368_vm1, %v339_v10 }
  0x1b   : > { %462 = vmatprep.mubr.f32.mxu0 %v853_v0 }
  0x1e   : > { %768 = vmatmul.mubr.msk.f32.gmra.mrb[4].mxu0 %vm368_vm1, %v340_v11 }
  0x1f   : > { %468 = vmatprep.mubr.f32.mxu0 %v853_v0 }
  0x22   : > { %769 = vmatmul.mubr.msk.f32.gmra.mrb[6].mxu0 %vm368_vm1, %v341_v12 }
  0x88   : > { %v349_v13 = vpop.permute.xlu0 %348  ;;  %v359_v24 = vpop.permute.xlu1 %358 }
  0x8c   : > { %v354_v19 = vpop.permute.xlu0 %353  ;;  %v364_v33 = vpop.permute.xlu1 %363 }
  0xe9   : > { %v452_v14 = vpop.f32.mrb[0].mxu0 }
  0xea   : > { %v453_v15 = vadd.f32 %v452_v14, %v349_v13  ;;  %v454_v16 = vpop.f32.mrb[1].mxu0  ;;  %v855_v14 = vmov 839922192  }
  0xeb   : > { %v455_v17 = vadd.f32 %v454_v16, %v349_v13  ;;  %v516_v13 = vld [vmem:[%s959_s3] sm:$0xf]  ;;  %v610_v16 = vlaneseq }
  0xec   : > { %v483_v18 = vmul.f32 0.70710677, %v453_v15  ;;  %v475_v47 = vmul.f32 0.5, %v453_v15  ;;  %v608_v15 = vunpack.c.l.s4 %v855_v14 }
  0xed   : > { %v484_v20 = vmul.f32 0.70710677, %v455_v17  ;;  %v458_v21 = vpop.f32.mrb[2].mxu0  ;;  %v476_v50 = vmul.f32 0.5, %v455_v17 }
  0xee   : > { %813 = verf.f32 %v483_v18  ;;  %v459_v22 = vadd.f32 %v458_v21, %v354_v19  ;;  %v460_v23 = vpop.f32.mrb[3].mxu0  ;;  %v609_v17 = vunpack.c.0.s8 %v608_v15  ;;  %v611_v18 = vshrl.u32 %v610_v16, 7 }
  0xef   : > { %815 = verf.f32 %v484_v20  ;;  %v461_v25 = vadd.f32 %v460_v23, %v354_v19  ;;  %v606_v20 = vpop.permute.xlu0 %605 }
  0xf0   : > { %v485_v26 = vmul.f32 0.70710677, %v459_v22  ;;  %v477_v48 = vmul.f32 0.5, %v459_v22  ;;  %v612_v19 = vsub.s32 %v609_v17, %v611_v18 }
  0xf1   : > { %v486_v27 = vmul.f32 0.70710677, %v461_v25  ;;  %v464_v28 = vpop.f32.mrb[4].mxu0  ;;  %v478_v51 = vmul.f32 0.5, %v461_v25 }
  0xf2   : > { %817 = verf.f32 %v485_v26  ;;  %v465_v29 = vadd.f32 %v464_v28, %v359_v24  ;;  %v466_v30 = vpop.f32.mrb[5].mxu0  ;;  %v613_v23 = vrot.slane %v606_v20, %v612_v19 }
  0xf3   : > { %819 = verf.f32 %v486_v27  ;;  %v467_v31 = vadd.f32 %v466_v30, %v359_v24 }
  0xf4   : > { %v487_v32 = vmul.f32 0.70710677, %v465_v29  ;;  %v479_v1 = vmul.f32 0.5, %v465_v29 }
  0xf5   : > { %v488_v34 = vmul.f32 0.70710677, %v467_v31  ;;  %v470_v35 = vpop.f32.mrb[6].mxu0  ;;  %v480_v4 = vmul.f32 0.5, %v467_v31 }
  0xf6   : > { %821 = verf.f32 %v487_v32  ;;  %v471_v36 = vadd.f32 %v470_v35, %v364_v33  ;;  %v472_v37 = vpop.f32.mrb[7].mxu0 }
  0xf7   : > { %823 = verf.f32 %v488_v34  ;;  %v473_v38 = vadd.f32 %v472_v37, %v364_v33 }
  0xf8   : > { %v814_v39 = vpop.eup %813  ;;  %v489_v40 = vmul.f32 0.70710677, %v471_v36  ;;  %v481_v2 = vmul.f32 0.5, %v471_v36 }
  0xf9   : > { %v816_v41 = vpop.eup %815  ;;  %v490_v42 = vmul.f32 0.70710677, %v473_v38  ;;  %v499_v43 = vadd.f32 1.0, %v814_v39  ;;  %v482_v5 = vmul.f32 0.5, %v473_v38 }
  0xfa   : > { %825 = verf.f32 %v489_v40  ;;  %v500_v45 = vadd.f32 1.0, %v816_v41 }
  0xfb   : > { %827 = verf.f32 %v490_v42  ;;  %v507_v53 = vmul.f32 %v499_v43, %v475_v47 }
  0xfc   : > { %v818_v44 = vpop.eup %817  ;;  %v508_v56 = vmul.f32 %v500_v45, %v476_v50 }
  0xfd   : > { %v820_v46 = vpop.eup %819  ;;  %v501_v49 = vadd.f32 1.0, %v818_v44 }
  0xfe   : > { %v502_v52 = vadd.f32 1.0, %v820_v46 }
  0xff   : > { %v509_v54 = vmul.f32 %v501_v49, %v477_v48 }
 0x100   : > { %v822_v55 = vpop.eup %821  ;;  %v510_v57 = vmul.f32 %v502_v52, %v478_v51 }
 0x101   : > { %v824_v58 = vpop.eup %823  ;;  %v777_v59 = vpack.c.bf16 %v509_v54, %v507_v53  ;;  %v503_v61 = vadd.f32 1.0, %v822_v55 }
 0x102   : > { %v775_v60 = vpack.c.bf16 %v510_v57, %v508_v56  ;;  %v504_v63 = vadd.f32 1.0, %v824_v58 }
 0x103   : > { %v511_v7 = vmul.f32 %v503_v61, %v479_v1 }
 0x104   : > { %v826_v62 = vpop.eup %825  ;;  %776 = vmatprep.subr.bf16.mxu1 %v775_v60  ;;  %v512_v9 = vmul.f32 %v504_v63, %v480_v4 }
 0x105   : > { %v828_v0 = vpop.eup %827  ;;  %v505_v3 = vadd.f32 1.0, %v826_v62  ;;  %778 = vmatpush1.bf16.msra.mxu1 %v777_v59 }
 0x106   : > { %v506_v6 = vadd.f32 1.0, %v828_v0 }
 0x107   : > { %v513_v8 = vmul.f32 %v505_v3, %v481_v2 }
 0x108   : > { %v514_v10 = vmul.f32 %v506_v6, %v482_v5 }
 0x109   : > { %v781_v11 = vpack.c.bf16 %v513_v8, %v511_v7 }
 0x10a   : > { %v779_v12 = vpack.c.bf16 %v514_v10, %v512_v9 }
 0x10c   : > { %780 = vmatprep.subr.bf16.mxu1 %v779_v12 }
 0x10d   : > { %782 = vmatpush1.bf16.msra.mxu1 %v781_v11 }
 0x110   : > { %770 = vmatmul.mubr.msk.f32.vlgmr.msra.gmra.mrb[0].mxu1 %vm517_vm2, %v516_v13 }
 0x1e3   : > { %v587_v21 = vpop.f32.mrb[0].mxu1 }
 0x1e4   : > { %v589_v22 = vpop.f32.mrb[1].mxu1 }
 0x1e5   : > { %v594_v24 = vcombine.low %v587_v21, %v589_v22 }
 0x1e7   : > { %v615_v25 = vadd.f32 %v613_v23, %v594_v24 }
 0x1e9   : > { %616 = vst [vmem:[%s330_s28] sm:$0xff] %v615_v25 }
 0x1ea PF: > { %s15_s20 = sadd.s32 1, %s851_s20   ;;  %s962_s18 = smov %s847_s19 }
 0x1eb   : > { %p12_p5 = scmp.ge.s32.totalorder %s15_s20, 4   ;;  %s963_s19 = smov %s965_s21 }
 0x1ed   :  { %14 = sbr.rel (!%p12_p5) target bundleno = 2 (0x2), region = 87 }

</bundles_post_ra>
